<compile_context>
chip_gen: v7x
topology: tpu7x:2x2x1
jax: 0.10.0
libtpu: 0.0.40
codegen_flags: <defaults>
</compile_context>

<pallas_src>
import jax
import jax.numpy as jnp
from jax.experimental import pallas as pl
from jax.experimental.pallas import tpu as pltpu


def _round_up(x, m):
    return ((x + m - 1) // m) * m


def _gru_cell_kernel(x_ref, h_ref, wx_ref, wh_ref, b3_ref, bhn_ref, hy_ref):
    """One batch tile of the fused GRU cell.

    x_ref  : (tile_b, in)     caller dtype
    h_ref  : (tile_b, Hp)     caller dtype (H zero-padded to Hp)
    wx_ref : (in, 3*Hp)       bf16, gate order [r | z | n]
    wh_ref : (Hp, 3*Hp)       bf16
    b3_ref : (1, 3*Hp)        f32, [bx_r+bh_r | bx_z+bh_z | bx_n]
    bhn_ref: (1, Hp)          f32, bh_n (added inside the r * h_n term)
    hy_ref : (tile_b, Hp)
    """
    hp = hy_ref.shape[-1]

    # MXU operands in bf16; accumulation and the whole epilogue in f32.
    x = x_ref[...].astype(jnp.bfloat16)
    h_f32 = h_ref[...].astype(jnp.float32)
    h = h_f32.astype(jnp.bfloat16)

    # Two wide, lane-dense matmuls (N = 3*Hp) instead of six per-gate ones.
    gx = jnp.dot(x, wx_ref[...], preferred_element_type=jnp.float32) + b3_ref[...]
    gh = jnp.dot(h, wh_ref[...], preferred_element_type=jnp.float32)

    def sigmoid(z):
        # sigmoid(z) = 0.5*(1 + tanh(z/2)): one EUP pass instead of exp + recip.
        return 0.5 * (jnp.tanh(0.5 * z) + 1.0)

    # Static, vreg-aligned lane slices (hp is a multiple of 128).
    r = sigmoid(gx[:, 0:hp] + gh[:, 0:hp])
    z = sigmoid(gx[:, hp:2 * hp] + gh[:, hp:2 * hp])
    n = jnp.tanh(gx[:, 2 * hp:3 * hp] + r * (gh[:, 2 * hp:3 * hp] + bhn_ref[...]))
    hy = n + z * (h_f32 - n)
    hy_ref[...] = hy.astype(hy_ref.dtype)


def pack_gru_params(w_x2h, b_x2h, w_h2h, b_h2h, *, compute_dtype=jnp.bfloat16):
    """Repack PyTorch-layout GRUCell parameters for the Pallas kernel.

    Call ONCE (outside any scan / per-timestep loop): it materializes the
    transposed, lane-padded, bf16 weight copies.
    """
    three_h, input_size = w_x2h.shape
    H = three_h // 3
    Hp = _round_up(H, 128)  # lane-dense output / vreg-aligned gate slices

    # nn.Linear computes y = x @ W.T + b; chunk(3, 1) -> [r | z | n] columns.
    wx = jnp.transpose(w_x2h.reshape(3, H, input_size), (0, 2, 1))   # (3, in, H)
    wh = jnp.transpose(w_h2h.reshape(3, H, H), (0, 2, 1))            # (3, H, H)
    wx = jnp.pad(wx, ((0, 0), (0, 0), (0, Hp - H)))
    wh = jnp.pad(wh, ((0, 0), (0, Hp - H), (0, Hp - H)))
    wx_packed = jnp.transpose(wx, (1, 0, 2)).reshape(input_size, 3 * Hp)
    wh_packed = jnp.transpose(wh, (1, 0, 2)).reshape(Hp, 3 * Hp)

    bx = b_x2h.reshape(3, H).astype(jnp.float32)
    bh = b_h2h.reshape(3, H).astype(jnp.float32)
    # Fold r/z biases; only the n gate needs bh_n separately (inside r * h_n).
    b3 = jnp.stack([bx[0] + bh[0], bx[1] + bh[1], bx[2]], axis=0)    # (3, H)
    b3 = jnp.pad(b3, ((0, 0), (0, Hp - H))).reshape(1, 3 * Hp)
    bh_n = jnp.pad(bh[2], (0, Hp - H)).reshape(1, Hp)

    return dict(wx=wx_packed.astype(compute_dtype),
                wh=wh_packed.astype(compute_dtype),
                b3=b3, bh_n=bh_n,
                hidden_size=H, hidden_padded=Hp, input_size=input_size)


def _choose_tiling(B, input_size, Hp, in_bytes, row_tile, vmem_target):
    """Pick (tile, n_tiles, padded_B, vmem_limit) from a VMEM budget."""
    # Resident weights (bf16, auto-pipeline keeps 2 buffers even though the
    # constant index_map means they are DMA'd from HBM only once) + biases.
    weights = 2 * 2 * (input_size * 3 * Hp + Hp * 3 * Hp)
    biases = 2 * 4 * (3 * Hp + Hp)
    fixed = weights + biases
    # Per batch row: double-buffered x / h / hy tiles + f32 matmul outputs and
    # gate temporaries of the (fully unrolled) epilogue.
    per_row = 2 * in_bytes * (input_size + 2 * Hp) + 4 * (2 * 3 * Hp + 6 * Hp)

    budget = vmem_target - fixed - (2 << 20)
    fit_rows = max(8, (budget // per_row) // 8 * 8) if budget > 8 * per_row else 8
    target = max(8, min(row_tile, fit_rows))

    n_tiles = pl.cdiv(B, target)
    # v7x has 2 TensorCores/chip: give the 'parallel' batch axis >= 2 tiles as
    # soon as there are >= 2 full sublanes of rows. (No-op on v5e/v6e.)
    if B >= 16:
        n_tiles = max(n_tiles, 2)
    # Minimize padding: at most <8 extra rows per tile (v5e: jnp.pad re-writes
    # x/h in HBM, so keep it tiny; no pad at all when B already lines up).
    tile = _round_up(pl.cdiv(B, n_tiles), 8)
    padded = tile * n_tiles
    vmem_limit = fixed + tile * per_row + (4 << 20)
    return int(tile), int(n_tiles), int(padded), int(vmem_limit)


def gru_cell_packed(x, hidden, params, *, row_tile=512,
                    vmem_target=56 * 1024 * 1024):
    """Fused GRUCell forward using pre-packed parameters (see pack_gru_params)."""
    H = params["hidden_size"]
    Hp = params["hidden_padded"]
    input_size = params["input_size"]

    x2 = x.reshape(-1, x.shape[1])                 # x.view(-1, x.size(1))
    if x2.shape[1] != input_size:
        raise ValueError("x feature dim does not match packed input_size")
    B = x2.shape[0]
    h2 = hidden.reshape(-1, H)
    if h2.shape[0] != B:
        raise ValueError("hidden batch does not match x batch")

    in_bytes = jnp.dtype(x2.dtype).itemsize
    tile, n_tiles, padded, vmem_limit = _choose_tiling(
        B, input_size, Hp, in_bytes, row_tile, vmem_target)

    if padded != B:
        x2 = jnp.pad(x2, ((0, padded - B), (0, 0)))
        h2 = jnp.pad(h2, ((0, padded - B), (0, Hp - H)))
    elif Hp != H:
        h2 = jnp.pad(h2, ((0, 0), (0, Hp - H)))

    out = pl.pallas_call(
        _gru_cell_kernel,
        out_shape=jax.ShapeDtypeStruct((padded, Hp), hidden.dtype),
        grid_spec=pltpu.PrefetchScalarGridSpec(
            num_scalar_prefetch=0,
            grid=(n_tiles,),
            in_specs=[
                pl.BlockSpec((tile, input_size), lambda i: (i, 0)),   # x
                pl.BlockSpec((tile, Hp), lambda i: (i, 0)),           # hidden
                pl.BlockSpec((input_size, 3 * Hp), lambda i: (0, 0)),  # Wx (bf16)
                pl.BlockSpec((Hp, 3 * Hp), lambda i: (0, 0)),          # Wh (bf16)
                pl.BlockSpec((1, 3 * Hp), lambda i: (0, 0)),           # folded bias
                pl.BlockSpec((1, Hp), lambda i: (0, 0)),               # bh_n
            ],
            out_specs=pl.BlockSpec((tile, Hp), lambda i: (i, 0)),
        ),
        compiler_params=pltpu.CompilerParams(
            dimension_semantics=("parallel",),
            vmem_limit_bytes=int(min(max(vmem_limit, 32 << 20), 128 << 20)),
        ),
    )(x2, h2, params["wx"], params["wh"], params["b3"], params["bh_n"])

    return out[:B, :H]


def gru_cell(x, hidden, w_x2h, b_x2h, w_h2h, b_h2h, **kwargs):
    """Convenience wrapper: pack params (do this once per cell!) + run kernel."""
    params = pack_gru_params(w_x2h, b_x2h, w_h2h, b_h2h)
    return gru_cell_packed(x, hidden, params, **kwargs)


def gru_cell_ref(x, hidden, w_x2h, b_x2h, w_h2h, b_h2h,
                 matmul_dtype=jnp.float32):
    """Pure-JAX reference matching the PyTorch forward (w=None, w1=None)."""
    x2 = x.reshape(-1, x.shape[1])
    h = hidden.astype(jnp.float32)
    gate_x = jnp.dot(x2.astype(matmul_dtype), w_x2h.T.astype(matmul_dtype),
                     preferred_element_type=jnp.float32) + b_x2h.astype(jnp.float32)
    gate_h = jnp.dot(h.astype(matmul_dtype), w_h2h.T.astype(matmul_dtype),
                     preferred_element_type=jnp.float32) + b_h2h.astype(jnp.float32)
    H = hidden.shape[-1]
    i_r, i_i, i_n = gate_x[:, :H], gate_x[:, H:2 * H], gate_x[:, 2 * H:]
    h_r, h_i, h_n = gate_h[:, :H], gate_h[:, H:2 * H], gate_h[:, 2 * H:]
    resetgate = jax.nn.sigmoid(i_r + h_r)
    inputgate = jax.nn.sigmoid(i_i + h_i)
    newgate = jnp.tanh(i_n + resetgate * h_n)
    hy = newgate + inputgate * (h - newgate)
    return hy.astype(hidden.dtype)


if __name__ == "__main__":
    key = jax.random.PRNGKey(0)

    def make_case(k, batch, input_size, hidden_size):
        k_x, k_h, k_wx, k_bx, k_wh, k_bh = jax.random.split(k, 6)
        std = 0.1  # reset_parameters(): every parameter ~ U(-0.1, 0.1)
        x = jax.random.normal(k_x, (batch, input_size), dtype=jnp.float32)
        hidden = jax.random.normal(k_h, (batch, hidden_size), dtype=jnp.float32)
        w_x2h = jax.random.uniform(k_wx, (3 * hidden_size, input_size),
                                   minval=-std, maxval=std, dtype=jnp.float32)
        b_x2h = jax.random.uniform(k_bx, (3 * hidden_size,),
                                   minval=-std, maxval=std, dtype=jnp.float32)
        w_h2h = jax.random.uniform(k_wh, (3 * hidden_size, hidden_size),
                                   minval=-std, maxval=std, dtype=jnp.float32)
        b_h2h = jax.random.uniform(k_bh, (3 * hidden_size,),
                                   minval=-std, maxval=std, dtype=jnp.float32)
        return x, hidden, w_x2h, b_x2h, w_h2h, b_h2h

    k1, k2 = jax.random.split(key)
    # case 1: batch not a multiple of 8 (row padding) + H=32 (lane pad to 128)
    # case 2: batch >= 16 -> >= 2 grid tiles on the 'parallel' (dual-TC) axis
    cases = [(k1, (6, 32, 32)), (k2, (20, 48, 32))]
    for ck, (batch, in_sz, hid) in cases:
        args = make_case(ck, batch, in_sz, hid)
        hy = jax.block_until_ready(gru_cell(*args))
        assert hy.shape == (batch, hid)

        ref_bf16 = gru_cell_ref(*args, matmul_dtype=jnp.bfloat16)
        ref_f32 = gru_cell_ref(*args, matmul_dtype=jnp.float32)
        assert jnp.allclose(hy, ref_bf16, atol=1e-4, rtol=1e-4), \
            "mismatch vs bf16-matmul reference"
        assert jnp.allclose(hy, ref_f32, atol=5e-2, rtol=5e-2), \
            "mismatch vs f32 reference"

    print("KERNEL_OK")
</pallas_src>

<mosaic_0001>
module attributes {stable_mosaic.version = 11 : i64} {
  func.func @_gru_cell_kernel(%arg0: i32, %arg1: memref<8x32xf32, #tpu.memory_space<vmem>>, %arg2: memref<8x128xf32, #tpu.memory_space<vmem>>, %arg3: memref<32x384xbf16, #tpu.memory_space<vmem>>, %arg4: memref<128x384xbf16, #tpu.memory_space<vmem>>, %arg5: memref<1x384xf32, #tpu.memory_space<vmem>>, %arg6: memref<1x128xf32, #tpu.memory_space<vmem>>, %arg7: memref<8x128xf32, #tpu.memory_space<vmem>>) attributes {dimension_semantics = [#tpu.dimension_semantics<parallel>], iteration_bounds = array<i64: 1>, scalar_prefetch = 0 : i64, scratch_operands = 0 : i64, tpu.core_type = #tpu.core_type<tc>, window_params = [{transform_indices = @transform_0, window_bounds = array<i64: 8, 32>}, {transform_indices = @transform_1, window_bounds = array<i64: 8, 128>}, {pipeline_mode = #tpu.pipeline_mode<synchronous>, transform_indices = @transform_2, window_bounds = array<i64: 32, 384>}, {pipeline_mode = #tpu.pipeline_mode<synchronous>, transform_indices = @transform_3, window_bounds = array<i64: 128, 384>}, {pipeline_mode = #tpu.pipeline_mode<synchronous>, transform_indices = @transform_4, window_bounds = array<i64: 1, 384>}, {pipeline_mode = #tpu.pipeline_mode<synchronous>, transform_indices = @transform_5, window_bounds = array<i64: 1, 128>}, {transform_indices = @transform_6, window_bounds = array<i64: 8, 128>}]} {
    %c0 = arith.constant 0 : index
    %c0_0 = arith.constant 0 : index
    %0 = vector.load %arg1[%c0, %c0_0] : memref<8x32xf32, #tpu.memory_space<vmem>>, vector<8x32xf32>
    %1 = arith.truncf %0 : vector<8x32xf32> to vector<8x32xbf16>
    %c0_1 = arith.constant 0 : index
    %c0_2 = arith.constant 0 : index
    %2 = vector.load %arg2[%c0_1, %c0_2] : memref<8x128xf32, #tpu.memory_space<vmem>>, vector<8x128xf32>
    %3 = arith.truncf %2 : vector<8x128xf32> to vector<8x128xbf16>
    %c0_3 = arith.constant 0 : index
    %c0_4 = arith.constant 0 : index
    %4 = vector.load %arg3[%c0_3, %c0_4] : memref<32x384xbf16, #tpu.memory_space<vmem>>, vector<32x384xbf16>
    %cst = arith.constant dense<0.000000e+00> : vector<8x384xf32>
    %5 = tpu.matmul %1, %4, %cst {dimension_numbers = #tpu.dot_dimension_numbers<[1], [0], [0], [1], [0, 0, 1, 1], [], []>} : vector<8x32xbf16>, vector<32x384xbf16>, vector<8x384xf32> -> vector<8x384xf32>
    %c0_5 = arith.constant 0 : index
    %c0_6 = arith.constant 0 : index
    %6 = vector.load %arg5[%c0_5, %c0_6] : memref<1x384xf32, #tpu.memory_space<vmem>>, vector<1x384xf32>
    %7 = vector.broadcast %6 : vector<1x384xf32> to vector<8x384xf32>
    %8 = arith.addf %5, %7 : vector<8x384xf32>
    %c0_7 = arith.constant 0 : index
    %c0_8 = arith.constant 0 : index
    %9 = vector.load %arg4[%c0_7, %c0_8] : memref<128x384xbf16, #tpu.memory_space<vmem>>, vector<128x384xbf16>
    %cst_9 = arith.constant dense<0.000000e+00> : vector<8x384xf32>
    %10 = tpu.matmul %3, %9, %cst_9 {dimension_numbers = #tpu.dot_dimension_numbers<[1], [0], [0], [1], [0, 0, 1, 1], [], []>} : vector<8x128xbf16>, vector<128x384xbf16>, vector<8x384xf32> -> vector<8x384xf32>
    %11 = vector.extract_strided_slice %8 {offsets = [0, 0], sizes = [8, 128], strides = [1, 1]} : vector<8x384xf32> to vector<8x128xf32>
    %12 = vector.extract_strided_slice %10 {offsets = [0, 0], sizes = [8, 128], strides = [1, 1]} : vector<8x384xf32> to vector<8x128xf32>
    %13 = arith.addf %11, %12 : vector<8x128xf32>
    %cst_10 = arith.constant 5.000000e-01 : f32
    %14 = vector.broadcast %cst_10 : f32 to vector<8x128xf32>
    %15 = arith.mulf %14, %13 : vector<8x128xf32>
    %16 = math.tanh %15 : vector<8x128xf32>
    %cst_11 = arith.constant 1.000000e+00 : f32
    %17 = vector.broadcast %cst_11 : f32 to vector<8x128xf32>
    %18 = arith.addf %16, %17 : vector<8x128xf32>
    %cst_12 = arith.constant 5.000000e-01 : f32
    %19 = vector.broadcast %cst_12 : f32 to vector<8x128xf32>
    %20 = arith.mulf %19, %18 : vector<8x128xf32>
    %21 = vector.extract_strided_slice %8 {offsets = [0, 128], sizes = [8, 128], strides = [1, 1]} : vector<8x384xf32> to vector<8x128xf32>
    %22 = vector.extract_strided_slice %10 {offsets = [0, 128], sizes = [8, 128], strides = [1, 1]} : vector<8x384xf32> to vector<8x128xf32>
    %23 = arith.addf %21, %22 : vector<8x128xf32>
    %cst_13 = arith.constant 5.000000e-01 : f32
    %24 = vector.broadcast %cst_13 : f32 to vector<8x128xf32>
    %25 = arith.mulf %24, %23 : vector<8x128xf32>
    %26 = math.tanh %25 : vector<8x128xf32>
    %cst_14 = arith.constant 1.000000e+00 : f32
    %27 = vector.broadcast %cst_14 : f32 to vector<8x128xf32>
    %28 = arith.addf %26, %27 : vector<8x128xf32>
    %cst_15 = arith.constant 5.000000e-01 : f32
    %29 = vector.broadcast %cst_15 : f32 to vector<8x128xf32>
    %30 = arith.mulf %29, %28 : vector<8x128xf32>
    %31 = vector.extract_strided_slice %8 {offsets = [0, 256], sizes = [8, 128], strides = [1, 1]} : vector<8x384xf32> to vector<8x128xf32>
    %32 = vector.extract_strided_slice %10 {offsets = [0, 256], sizes = [8, 128], strides = [1, 1]} : vector<8x384xf32> to vector<8x128xf32>
    %c0_16 = arith.constant 0 : index
    %c0_17 = arith.constant 0 : index
    %33 = vector.load %arg6[%c0_16, %c0_17] : memref<1x128xf32, #tpu.memory_space<vmem>>, vector<1x128xf32>
    %34 = vector.broadcast %33 : vector<1x128xf32> to vector<8x128xf32>
    %35 = arith.addf %32, %34 : vector<8x128xf32>
    %36 = arith.mulf %20, %35 : vector<8x128xf32>
    %37 = arith.addf %31, %36 : vector<8x128xf32>
    %38 = math.tanh %37 : vector<8x128xf32>
    %39 = arith.subf %2, %38 : vector<8x128xf32>
    %40 = arith.mulf %30, %39 : vector<8x128xf32>
    %41 = arith.addf %38, %40 : vector<8x128xf32>
    %c0_18 = arith.constant 0 : index
    %c0_19 = arith.constant 0 : index
    %42 = vector.load %arg7[%c0_18, %c0_19] : memref<8x128xf32, #tpu.memory_space<vmem>>, vector<8x128xf32>
    tpu.vector_store %arg7[%c0_18, %c0_19], %41 {strides = array<i32>} : memref<8x128xf32, #tpu.memory_space<vmem>>, vector<8x128xf32>,
    return
  }
  func.func @transform_0(%arg0: i32) -> (i32, i32) {
    %c0_i32 = arith.constant 0 : i32
    %c0_i32_0 = arith.constant 0 : i32
    return %arg0, %c0_i32 : i32, i32
  }
  func.func @transform_1(%arg0: i32) -> (i32, i32) {
    %c0_i32 = arith.constant 0 : i32
    %c0_i32_0 = arith.constant 0 : i32
    return %arg0, %c0_i32 : i32, i32
  }
  func.func @transform_2(%arg0: i32) -> (i32, i32) {
    %c0_i32 = arith.constant 0 : i32
    %c0_i32_0 = arith.constant 0 : i32
    %c0_i32_1 = arith.constant 0 : i32
    return %c0_i32, %c0_i32_0 : i32, i32
  }
  func.func @transform_3(%arg0: i32) -> (i32, i32) {
    %c0_i32 = arith.constant 0 : i32
    %c0_i32_0 = arith.constant 0 : i32
    %c0_i32_1 = arith.constant 0 : i32
    return %c0_i32, %c0_i32_0 : i32, i32
  }
  func.func @transform_4(%arg0: i32) -> (i32, i32) {
    %c0_i32 = arith.constant 0 : i32
    %c0_i32_0 = arith.constant 0 : i32
    %c0_i32_1 = arith.constant 0 : i32
    return %c0_i32, %c0_i32_0 : i32, i32
  }
  func.func @transform_5(%arg0: i32) -> (i32, i32) {
    %c0_i32 = arith.constant 0 : i32
    %c0_i32_0 = arith.constant 0 : i32
    %c0_i32_1 = arith.constant 0 : i32
    return %c0_i32, %c0_i32_0 : i32, i32
  }
  func.func @transform_6(%arg0: i32) -> (i32, i32) {
    %c0_i32 = arith.constant 0 : i32
    %c0_i32_0 = arith.constant 0 : i32
    return %arg0, %c0_i32 : i32, i32
  }
}

</mosaic_0001>

<bundles_post_ra>
// kernel: tpu_custom_call.1
= control target key start
LH: loop header
LB: loop body
LE: loop exit
PB: predicated region body
PF: predicated region fallthrough
CT: control target
= control target key end

     0   :  { %11 = vsyncpa [#allocation3], 0  ;;  %s885_s0 = inlined_call_operand.hbm [shape: f32[8,32], index: 0, kind: input, shape index: {}]   ;;  %s886_s1 = inlined_call_operand.hbm [shape: f32[8,128], index: 1, kind: input, shape index: {}]   ;;  %s887_s2 = inlined_call_operand.hbm [shape: bf16[32,384], index: 2, kind: input, shape index: {}]   ;;  %s888_s3 = inlined_call_operand.hbm [shape: bf16[128,384], index: 3, kind: input, shape index: {}]   ;;  %s889_s4 = inlined_call_operand.vmem [shape: f32[1,384], index: 4, kind: input, shape index: {}]   ;;  %s890_s5 = inlined_call_operand.vmem [shape: f32[1,128], index: 5, kind: input, shape index: {}]   ;;  %s891_s6 = inlined_call_operand.hbm [shape: f32[8,128], index: 6, kind: output, shape index: {}]  }
   0x1   :  { %12 = vsyncpa [#allocation6], 0 }
   0x2   :  { %13 = vsyncpa [#allocation9], 0 }
   0x3   :  { %14 = vsyncpa [#allocation4], 0  ;;  %s758_s21 = smov [#allocation5]   ;;  %s759_s23 = smov [#allocation2]  }
   0x4   :  { %s31_s22 = sshll.u32 %s758_s21, 4  ;;  %s21_s24 = sshll.u32 %s759_s23, 4  ;;  %s32_s22 = int_to_ptr.vmem [resolvable:$true] %s31_s22  ;;  %s22_s24 = int_to_ptr.vmem [resolvable:$true] %s21_s24 }
   0x5   :  { %s640_s27 = scalar_lea.hbm %s886_s1, 128 }
   0x6   :  { %p641_p0 = scmp.ne.s32.totalorder %s886_s1, %s640_s27  ;;  %p644_p1 = scmp.lt.u32.totalorder %s640_s27, %s886_s1 }
   0x8   :  { %p646_p2 = pnand %p644_p1, %p641_p0 }
   0xa   :  { %649 = shalt.err (!%p646_p2)
}
   0xb   :  { %s650_s8 = scalar_lea.vmem %s32_s22, 128  ;;  %p655_p4 = scmp.lt.s32.totalorder %s32_s22, %s32_s22 }
   0xc   :  { %p651_p3 = scmp.ne.s32.totalorder %s32_s22, %s650_s8  ;;  %p656_p5 = scmp.lt.s32.totalorder %s650_s8, %s650_s8 }
   0xe   :  { %p657_p6 = por %p656_p5, %p655_p4 }
  0x10   :  { %p658_p7 = pnand %p657_p6, %p651_p3 }
  0x12   :  { %661 = shalt.err (!%p658_p7)
}
  0x13   :  { %34 = dma.hbm_to_vmem [thread:$0]  %s886_s1, 128, %s32_s22, [#allocation6]  }
  0x14   :  { %s662_s13 = scalar_lea.hbm %s885_s0, 128 }
  0x15   :  { %p663_p8 = scmp.ne.s32.totalorder %s885_s0, %s662_s13  ;;  %p666_p9 = scmp.lt.u32.totalorder %s662_s13, %s885_s0 }
  0x17   :  { %p668_p10 = pnand %p666_p9, %p663_p8 }
  0x19   :  { %671 = shalt.err (!%p668_p10)
}
  0x1a   :  { %s672_s18 = scalar_lea.vmem %s22_s24, 128  ;;  %p677_p12 = scmp.lt.s32.totalorder %s22_s24, %s22_s24 }
  0x1b   :  { %p673_p11 = scmp.ne.s32.totalorder %s22_s24, %s672_s18  ;;  %p678_p13 = scmp.lt.s32.totalorder %s672_s18, %s672_s18 }
  0x1d   :  { %p679_p0 = por %p678_p13, %p677_p12 }
  0x1f   :  { %p680_p1 = pnand %p679_p0, %p673_p11 }
  0x21   :  { %683 = shalt.err (!%p680_p1)
}
  0x22   :  { %24 = dma.hbm_to_vmem [thread:$0]  %s885_s0, 128, %s22_s24, [#allocation3]  }
  0x23   :  { %s760_s20 = smov [#allocation7]   ;;  %s684_s25 = scalar_lea.hbm %s887_s2, 768 }
  0x24   :  { %s40_s21 = sshll.u32 %s760_s20, 4  ;;  %p685_p2 = scmp.ne.s32.totalorder %s887_s2, %s684_s25  ;;  %s41_s21 = int_to_ptr.vmem [resolvable:$true] %s40_s21 }
  0x25   :  { %p688_p3 = scmp.lt.u32.totalorder %s684_s25, %s887_s2 }
  0x27   :  { %p690_p4 = pnand %p688_p3, %p685_p2 }
  0x29   :  { %693 = shalt.err (!%p690_p4)
}
  0x2a   :  { %s694_s30 = scalar_lea.vmem %s41_s21, 768  ;;  %p699_p6 = scmp.lt.s32.totalorder %s41_s21, %s41_s21 }
  0x2b   :  { %p695_p5 = scmp.ne.s32.totalorder %s41_s21, %s694_s30  ;;  %p700_p7 = scmp.lt.s32.totalorder %s694_s30, %s694_s30 }
  0x2d   :  { %p701_p8 = por %p700_p7, %p699_p6 }
  0x2f   :  { %p702_p9 = pnand %p701_p8, %p695_p5 }
  0x31   :  { %705 = shalt.err (!%p702_p9)
}
  0x32   :  { %s761_s0 = smov 192   ;;  %s762_s24 = smov 12  }
  0x33   :  { %46 = dma.hbm_to_vmem [thread:$0]  %s887_s2, 768, %s41_s21, [#allocation6], %s761_s0, %s761_s0, %s762_s24  }
  0x34   :  { %s763_s9 = smov [#allocation8]   ;;  %s706_s13 = scalar_lea.hbm %s888_s3, 3072 }
  0x35   :  { %s52_s10 = sshll.u32 %s763_s9, 4  ;;  %p707_p10 = scmp.ne.s32.totalorder %s888_s3, %s706_s13  ;;  %s53_s10 = int_to_ptr.vmem [resolvable:$true] %s52_s10 }
  0x36   :  { %p710_p11 = scmp.lt.u32.totalorder %s706_s13, %s888_s3 }
  0x38   :  { %p712_p12 = pnand %p710_p11, %p707_p10 }
  0x3a   :  { %715 = shalt.err (!%p712_p12)
}
  0x3b   :  { %s716_s18 = scalar_lea.vmem %s53_s10, 3072  ;;  %p721_p0 = scmp.lt.s32.totalorder %s53_s10, %s53_s10 }
  0x3c   :  { %p717_p13 = scmp.ne.s32.totalorder %s53_s10, %s716_s18  ;;  %p722_p1 = scmp.lt.s32.totalorder %s716_s18, %s716_s18 }
  0x3e   :  { %p723_p2 = por %p722_p1, %p721_p0 }
  0x40   :  { %p724_p3 = pnand %p723_p2, %p717_p13 }
  0x42   :  { %727 = shalt.err (!%p724_p3)
}
  0x43   :  { %58 = dma.hbm_to_vmem [thread:$0]  %s888_s3, 3072, %s53_s10, [#allocation9], %s761_s0, %s761_s0, %s762_s24  }
  0x44   :  { %750 = dma.done.wait [#allocation3], 128  }
  0x45   :  { %751 = vsyncadd [#allocation3], 4294967168 }
  0x46   :  { %752 = dma.done.wait [#allocation6], 896  }
  0x47   :  { %753 = vsyncadd [#allocation6], 4294966400 }
  0x48   :  { %754 = dma.done.wait [#allocation9], 3072  }
  0x49   :  { %755 = vsyncadd [#allocation9], 4294964224  ;;  %v764_v0 = vmov 0   ;;  %v765_v1 = vmov 0.0   ;;  %vm766_vm0 = vmmov 0   ;;  %v76_v7 = vld [vmem:[#allocation2] sm:$0xff]  ;;  %v90_v40 = vlaneseq }
  0x4a   :  { %173 = vmatprep.mubr.bf16.mxu0 %v764_v0  ;;  %550 = vmatprep.subr.bf16.mxu1 %v765_v1  ;;  %v594_v2 = vld [vmem:[#allocation7 + $0x4] ss:$12 sps:$4 sm:$0xff]   ;;  %v596_v3 = vld [vmem:[#allocation7] ss:$12 sps:$4 sm:$0xff]   ;;  %v597_v4 = vld [vmem:[#allocation7 + $0x1c] ss:$12 sps:$4 sm:$0xff]   ;;  %v77_v8 = vpack.c.bf16 %v76_v7, %v76_v7 }
  0x4b   :  { %554 = vmatprep.mubr.msk.bf16.mxu1 %vm766_vm0, %v765_v1  ;;  %141 = vmatprep.subr.bf16.mxu0 %v594_v2  ;;  %v599_v5 = vld [vmem:[#allocation7 + $0x18] ss:$12 sps:$4 sm:$0xff]   ;;  %v602_v6 = vld [vmem:[#allocation8 + $0x4] ss:$12 sps:$4 sm:$0xff]   ;;  %v600_v10 = vld [vmem:[#allocation8] ss:$12 sps:$4 sm:$0xff]  }
  0x4c   :  { %142 = vmatpush1.bf16.msra.mxu0 %v596_v3  ;;  %v606_v9 = vld [vmem:[#allocation7 + $0x8] ss:$12 sps:$4 sm:$0xff]   ;;  %vm137_vm1 = vcmask 261120   ;;  %v605_v11 = vld [vmem:[#allocation8 + $0x1c] ss:$12 sps:$4 sm:$0xff]   ;;  %v91_v41 = vshrl.u32 %v90_v40, 7 }
  0x4d   :  { %143 = vmatprep.subr.bf16.mxu0 %v597_v4  ;;  %551 = vmatpush3.bf16.msra.mxu1 %v606_v9  ;;  %v610_v12 = vld [vmem:[#allocation7 + $0x20] ss:$12 sps:$4 sm:$0xff]   ;;  %v603_v13 = vld [vmem:[#allocation8 + $0x18] ss:$12 sps:$4 sm:$0xff]   ;;  %v609_v14 = vld [vmem:[#allocation8 + $0x34] ss:$12 sps:$4 sm:$0xff]  }
  0x4e   :  { %552 = vmatprep.subr.bf16.mxu1 %v765_v1  ;;  %v614_v15 = vld [vmem:[#allocation8 + $0x8] ss:$12 sps:$4 sm:$0xff]   ;;  %v607_v16 = vld [vmem:[#allocation8 + $0x30] ss:$12 sps:$4 sm:$0xff]   ;;  %v613_v17 = vld [vmem:[#allocation8 + $0x4c] ss:$12 sps:$4 sm:$0xff]  }
  0x4f   :  { %v618_v18 = vld [vmem:[#allocation8 + $0x20] ss:$12 sps:$4 sm:$0xff]   ;;  %v611_v19 = vld [vmem:[#allocation8 + $0x48] ss:$12 sps:$4 sm:$0xff]   ;;  %v617_v20 = vld [vmem:[#allocation8 + $0x64] ss:$12 sps:$4 sm:$0xff]  }
  0x50   :  { %144 = vmatpush1.bf16.msra.mxu0 %v599_v5  ;;  %v622_v21 = vld [vmem:[#allocation8 + $0x38] ss:$12 sps:$4 sm:$0xff]   ;;  %v615_v22 = vld [vmem:[#allocation8 + $0x60] ss:$12 sps:$4 sm:$0xff]   ;;  %v621_v23 = vld [vmem:[#allocation8 + $0x7c] ss:$12 sps:$4 sm:$0xff]  }
  0x51   :  { %382 = vmatprep.subr.bf16.mxu0 %v602_v6  ;;  %553 = vmatpush3.bf16.msra.mxu1 %v610_v12  ;;  %v626_v24 = vld [vmem:[#allocation8 + $0x50] ss:$12 sps:$4 sm:$0xff]   ;;  %v619_v25 = vld [vmem:[#allocation8 + $0x78] ss:$12 sps:$4 sm:$0xff]   ;;  %v625_v26 = vld [vmem:[#allocation8 + $0x94] ss:$12 sps:$4 sm:$0xff]  }
  0x52   :  { %558 = vmatprep.subr.bf16.mxu1 %v765_v1  ;;  %v630_v27 = vld [vmem:[#allocation8 + $0x68] ss:$12 sps:$4 sm:$0xff]   ;;  %v623_v28 = vld [vmem:[#allocation8 + $0x90] ss:$12 sps:$4 sm:$0xff]   ;;  %v629_v29 = vld [vmem:[#allocation8 + $0xac] ss:$12 sps:$4 sm:$0xff]  }
  0x53   :  { %511 = vmatmul.mubr.msk.bf16.vlgmr.msra.gmra.mrb[0].mxu0 %vm137_vm1, %v77_v8  ;;  %v631_v30 = vld [vmem:[#allocation8 + $0x80] ss:$12 sps:$4 sm:$0xff]   ;;  %v627_v31 = vld [vmem:[#allocation8 + $0xa8] ss:$12 sps:$4 sm:$0xff]   ;;  %v632_v33 = vld [vmem:[#allocation8 + $0x98] ss:$12 sps:$4 sm:$0xff]  }
  0x54   :  { %383 = vmatpush1.bf16.msra.mxu0 %v600_v10  ;;  %414 = vmatprep.mubr.bf16.mxu0 %v764_v0  ;;  %v78_v32 = vld [vmem:[#allocation5] sm:$0xff]  ;;  %v633_v35 = vld [vmem:[#allocation8 + $0xb0] ss:$12 sps:$4 sm:$0xff]   ;;  %v92_v42 = vsub.s32 0, %v91_v41  ;;  %v88_v43 = vld [vmem:[%s889_s4] sm:$0x7] }
  0x55   :  { %384 = vmatprep.subr.bf16.mxu0 %v605_v11  ;;  %555 = vmatmul.mubr.msk.bf16.vlgmr.msra.gmra.mrb[0].mxu1 %vm137_vm1, %v77_v8  ;;  %v79_v34 = vpack.c.bf16 %v78_v32, %v78_v32  ;;  %v96_v48 = vsub.s32 1, %v91_v41  ;;  %v100_v58 = vsub.s32 2, %v91_v41  ;;  %v537_v59 = vld [vmem:[%s890_s5] ss:$0 sm:$0xff]  ;;  %s767_s4 = smov [#allocation10]  }
  0x56   :  { %559 = vmatpush3.bf16.msra.mxu1 %v614_v15  ;;  %574 = vmatprep.mubr.msk.bf16.mxu1 %vm766_vm0, %v765_v1  ;;  %v93_v44 = vrot.slane %v88_v43, %v92_v42  ;;  %s494_s22 = sshll.u32 %s767_s4, 4  ;;  %s495_s22 = int_to_ptr.vmem [resolvable:$true] %s494_s22 }
  0x57   :  { %560 = vmatprep.subr.bf16.mxu1 %v765_v1  ;;  %v97_v53 = vrot.slane %v88_v43, %v96_v48  ;;  %v101_v62 = vrot.slane %v88_v43, %v100_v58  ;;  %s728_s5 = scalar_lea.vmem %s495_s22, 128  ;;  %p733_p5 = scmp.lt.s32.totalorder %s495_s22, %s495_s22 }
  0x58   :  { %385 = vmatpush1.bf16.msra.mxu0 %v603_v13  ;;  %p729_p4 = scmp.ne.s32.totalorder %s495_s22, %s728_s5  ;;  %p734_p6 = scmp.lt.s32.totalorder %s728_s5, %s728_s5 }
  0x59   :  { %386 = vmatprep.subr.bf16.mxu0 %v609_v14 }
  0x5a   :  { %561 = vmatpush3.bf16.msra.mxu1 %v618_v18  ;;  %p735_p7 = por %p734_p6, %p733_p5 }
  0x5b   :  { %562 = vmatprep.subr.bf16.mxu1 %v765_v1 }
  0x5c   :  { %387 = vmatpush1.bf16.msra.mxu0 %v607_v16  ;;  %p736_p8 = pnand %p735_p7, %p729_p4 }
  0x5d   :  { %388 = vmatprep.subr.bf16.mxu0 %v613_v17 }
  0x5e   :  { %563 = vmatpush3.bf16.msra.mxu1 %v622_v21 }
  0x5f   :  { %564 = vmatprep.subr.bf16.mxu1 %v765_v1 }
  0x60   :  { %389 = vmatpush1.bf16.msra.mxu0 %v611_v19 }
  0x61   :  { %390 = vmatprep.subr.bf16.mxu0 %v617_v20 }
  0x62   :  { %565 = vmatpush3.bf16.msra.mxu1 %v626_v24 }
  0x63   :  { %566 = vmatprep.subr.bf16.mxu1 %v765_v1 }
  0x64   :  { %391 = vmatpush1.bf16.msra.mxu0 %v615_v22 }
  0x65   :  { %392 = vmatprep.subr.bf16.mxu0 %v621_v23 }
  0x66   :  { %567 = vmatpush3.bf16.msra.mxu1 %v630_v27 }
  0x67   :  { %568 = vmatprep.subr.bf16.mxu1 %v765_v1 }
  0x68   :  { %393 = vmatpush1.bf16.msra.mxu0 %v619_v25 }
  0x69   :  { %394 = vmatprep.subr.bf16.mxu0 %v625_v26 }
  0x6a   :  { %569 = vmatpush3.bf16.msra.mxu1 %v631_v30 }
  0x6b   :  { %570 = vmatprep.subr.bf16.mxu1 %v765_v1 }
  0x6c   :  { %395 = vmatpush1.bf16.msra.mxu0 %v623_v28 }
  0x6d   :  { %396 = vmatprep.subr.bf16.mxu0 %v629_v29 }
  0x6e   :  { %571 = vmatpush3.bf16.msra.mxu1 %v632_v33 }
  0x6f   :  { %572 = vmatprep.subr.bf16.mxu1 %v765_v1 }
  0x70   :  { %397 = vmatpush1.bf16.msra.mxu0 %v627_v31 }
  0x72   :  { %573 = vmatpush3.bf16.msra.mxu1 %v633_v35 }
  0x73   :  { %415 = vmatmul.mubr.bf16.vlgmr.msra.gmra.mrb[0].mxu0 %v79_v34 }
  0x75   :  { %575 = vmatmul.mubr.bf16.vlgmr.msra.gmra.mrb[4].mxu1 %v79_v34 }
 0x128   :  { %v216_v36 = vpop.f32.mrb[0].mxu1 }
 0x129   :  { %v556_v37 = vpop.f32.mrb[1].mxu1  ;;  %v217_v2 = vadd.f32 %v216_v36, %v101_v62 }
 0x12a   :  { %v219_v38 = vpop.f32.mrb[2].mxu1 }
 0x12b   :  { %v557_v39 = vpop.f32.mrb[3].mxu1 }
 0x146   :  { %v416_v45 = vpop.f32.mrb[0].mxu0 }
 0x147   :  { %v578_v46 = vadd.f32 %v416_v45, %v93_v44  ;;  %v418_v47 = vpop.f32.mrb[1].mxu0 }
 0x148   :  { %v420_v49 = vpop.f32.mrb[2].mxu0  ;;  %v457_v52 = vpop.f32.mrb[4].mxu1  ;;  %v579_v57 = vadd.f32 %v418_v47, %v97_v53 }
 0x149   :  { %v464_v50 = vmul.f32 0.5, %v578_v46  ;;  %v421_v51 = vpop.f32.mrb[3].mxu0  ;;  %v576_v54 = vpop.f32.mrb[5].mxu1  ;;  %v480_v0 = vadd.f32 %v537_v59, %v457_v52 }
 0x14a   :  { %v460_v55 = vpop.f32.mrb[6].mxu1  ;;  %v469_v60 = vmul.f32 0.5, %v579_v57 }
 0x14b   :  { %634 = vtanh.f32 %v464_v50  ;;  %v577_v56 = vpop.f32.mrb[7].mxu1 }
 0x14c   :  { %636 = vtanh.f32 %v469_v60 }
 0x155   :  { %v635_v61 = vpop.eup %634 }
 0x156   :  { %v466_v63 = vadd.f32 1.0, %v635_v61  ;;  %v637_v5 = vpop.eup %636 }
 0x157   :  { %v471_v6 = vadd.f32 1.0, %v637_v5 }
 0x158   :  { %v467_v1 = vmul.f32 0.5, %v466_v63 }
 0x159   :  { %v472_v8 = vmul.f32 0.5, %v471_v6 }
 0x15a   :  { %v481_v3 = vmul.f32 %v480_v0, %v467_v1 }
 0x15c   :  { %v482_v4 = vadd.f32 %v481_v3, %v217_v2 }
 0x15e   :  { %638 = vtanh.f32 %v482_v4 }
 0x168   :  { %v639_v7 = vpop.eup %638 }
 0x169   :  { %v484_v9 = vsub.f32 %v78_v32, %v639_v7 }
 0x16b   :  { %v485_v10 = vmul.f32 %v484_v9, %v472_v8 }
 0x16d   :  { %v486_v11 = vadd.f32 %v639_v7, %v485_v10 }
 0x16f   :  { %487 = vst [vmem:[#allocation10] sm:$0xff] %v486_v11 }
 0x170   :  { %739 = shalt.err (!%p736_p8)
}
 0x171   :  { %s740_s26 = scalar_lea.hbm %s891_s6, 128 }
 0x172   :  { %p741_p9 = scmp.ne.s32.totalorder %s891_s6, %s740_s26  ;;  %p744_p10 = scmp.lt.u32.totalorder %s740_s26, %s891_s6 }
 0x174   :  { %p746_p11 = pnand %p744_p10, %p741_p9 }
 0x176   :  { %749 = shalt.err (!%p746_p11)
}
 0x177   :  { %497 = dma.vmem_to_hbm [thread:$0]  %s495_s22, 128, %s891_s6, [#allocation4]  }
 0x178   :  { %756 = dma.done.wait [#allocation4], 128  }
 0x179   :  { %757 = vsyncadd [#allocation4], 4294967168 }
 0x17a   :  { %501 = vsyncpa [#allocation3], 1 }
 0x17b   :  { %502 = vsyncpa [#allocation6], 1 }
 0x17c   :  { %503 = vsyncpa [#allocation9], 1 }
 0x17d   :  { %504 = vsyncpa [#allocation4], 1 }

</bundles_post_ra>
